<compile_context>
chip_gen: v7x
topology: tpu7x:2x2x1
jax: 0.10.0
libtpu: 0.0.40
codegen_flags: <defaults>
</compile_context>

<pallas_src>
import jax
import jax.numpy as jnp
from jax.experimental import pallas as pl
from jax.experimental.pallas import tpu as pltpu

SIGMA_DATA = 0.5       # module default sigma_data
_ROW_CHUNK = 16        # rows (sublanes) processed per inner step: 2 f32 vregs / channel slab


def _edm_precond_kernel(a_ref, b_ref, base_ref, x_ref, lr_ref, o_ref):
    # x_ref/o_ref: (Cx, RT, L), lr_ref: (Clr, RT, L); folded scalar weights in SMEM.
    cx, rt, _ = o_ref.shape
    clr = lr_ref.shape[0]

    bidx = pl.program_id(0)
    a_off = bidx * (cx * cx)
    b_off = bidx * (clr * cx)
    s_off = bidx * cx

    # Fully-folded per-(batch, in_k, out_c) scalars (c_in/c_out/c_skip and
    # bias + c_noise*temb already baked in by the wrapper). Read once per grid step.
    a = [[a_ref[a_off + k * cx + c] for c in range(cx)] for k in range(cx)]
    bw = [[b_ref[b_off + k * cx + c] for c in range(cx)] for k in range(clr)]
    base = [base_ref[s_off + c] for c in range(cx)]

    def compute(r0, nrows):
        # Load each input slab once; reuse it for every output channel.
        xs = [x_ref[k, pl.ds(r0, nrows), :].astype(jnp.float32) for k in range(cx)]
        ls = [lr_ref[k, pl.ds(r0, nrows), :].astype(jnp.float32) for k in range(clr)]
        for c in range(cx):
            acc = xs[0] * a[0][c] + base[c]
            for k in range(1, cx):
                acc = acc + xs[k] * a[k][c]
            for k in range(clr):
                acc = acc + ls[k] * bw[k][c]
            o_ref[c, pl.ds(r0, nrows), :] = acc.astype(o_ref.dtype)

    chunk = min(_ROW_CHUNK, rt)
    n_full = rt // chunk
    rem = rt - n_full * chunk

    if n_full == 1:
        compute(0, chunk)
    else:
        def body(i, carry):
            compute(pl.multiple_of(i * chunk, chunk), chunk)
            return carry
        jax.lax.fori_loop(0, n_full, body, 0)

    if rem:  # static remainder chunk (only when the row-block isn't a multiple of 16)
        compute(n_full * chunk, rem)


def _pick_rows_tile(r, cap):
    """Largest row-block: full R if it fits, else the biggest 8-aligned divisor <= cap."""
    if r <= cap:
        return r
    t = (min(cap, r) // 8) * 8
    while t >= 8:
        if r % t == 0:
            return t
        t -= 8
    return r  # fallback: full extent (always layout-legal)


def edm_precond_sr(x_nchw, img_lr_nchw, sigma, wx, wlr, bias, temb, *,
                   sigma_data=SIGMA_DATA, max_block_rows=1024):
    """EDMPrecondSR.forward.  x: (N, Cout, H, W), img_lr: (N, Cin, H, W), sigma: (N,)."""
    N, Cx, H, W = x_nchw.shape
    Clr = img_lr_nchw.shape[1]
    HW = H * W

    # Pack pixels lane-dense: (rows, 128) slabs when HW is 128-divisible (free reshape).
    if HW % 128 == 0:
        L, R = 128, HW // 128
    else:
        L, R = HW, 1  # tiny / awkward images: single full-extent row (still correct)

    x = x_nchw.reshape(N, Cx, R, L)          # native dtype (bf16 ok); upcast in-kernel
    lr = img_lr_nchw.reshape(N, Clr, R, L)

    # --- EDM preconditioning scalars, fully folded into per-batch weights (tiny XLA op) ---
    sig = sigma.astype(jnp.float32).reshape(N)
    sd2 = sigma_data * sigma_data
    denom = sig * sig + sd2
    c_skip = sd2 / denom                                   # sigma_data^2 / (sigma^2 + sd^2)
    c_out = sig * sigma_data / jnp.sqrt(denom)
    c_in = 1.0 / jnp.sqrt(denom)
    c_noise = jnp.log(sig) / 4.0

    wx32 = wx.astype(jnp.float32)        # (Cx, Cx)  [in_k, out_c]
    wlr32 = wlr.astype(jnp.float32)      # (Clr, Cx)
    bias32 = bias.astype(jnp.float32)
    temb32 = temb.astype(jnp.float32)
    eye = jnp.eye(Cx, dtype=jnp.float32)

    # D[c] = sum_k A[b,k,c]*x[k] + sum_k B[b,k,c]*lr[k] + base[b,c]
    a_w = (c_out * c_in)[:, None, None] * wx32[None] + c_skip[:, None, None] * eye[None]
    b_w = c_out[:, None, None] * wlr32[None]
    base = c_out[:, None] * (bias32[None, :] + c_noise[:, None] * temb32[None, :])

    a_flat = a_w.reshape(-1)       # (N*Cx*Cx,)  — flat 1-D for compact SMEM residency
    b_flat = b_w.reshape(-1)       # (N*Clr*Cx,)
    base_flat = base.reshape(-1)   # (N*Cx,)

    rt = _pick_rows_tile(R, max_block_rows)   # ~2 MiB per input block at C=4, rt=1024
    n_row_blocks = R // rt

    out = pl.pallas_call(
        _edm_precond_kernel,
        out_shape=jax.ShapeDtypeStruct((N, Cx, R, L), jnp.float32),
        grid=(N, n_row_blocks),
        in_specs=[
            pl.BlockSpec(memory_space=pltpu.MemorySpace.SMEM),          # A   (N*Cx*Cx,)
            pl.BlockSpec(memory_space=pltpu.MemorySpace.SMEM),          # B   (N*Clr*Cx,)
            pl.BlockSpec(memory_space=pltpu.MemorySpace.SMEM),          # base (N*Cx,)
            pl.BlockSpec((None, Cx, rt, L), lambda b, t: (b, 0, t, 0)),   # x block
            pl.BlockSpec((None, Clr, rt, L), lambda b, t: (b, 0, t, 0)),  # img_lr block
        ],
        out_specs=pl.BlockSpec((None, Cx, rt, L), lambda b, t: (b, 0, t, 0)),
        compiler_params=pltpu.CompilerParams(
            dimension_semantics=("parallel", "parallel"),
            vmem_limit_bytes=32 << 20),   # ~12 MiB double-buffered working set; safe on v5e..v7x
    )(a_flat, b_flat, base_flat, x, lr)

    return out.reshape(N, Cx, H, W)


def edm_precond_sr_reference(x, lr, sigma, wx, wlr, bias, temb):
    """Pure-JAX reference mirroring the PyTorch forward (NCHW)."""
    x = x.astype(jnp.float32)
    sigma4 = sigma.astype(jnp.float32).reshape(-1, 1, 1, 1)
    sd2 = SIGMA_DATA ** 2
    c_skip = sd2 / (sigma4 ** 2 + sd2)
    c_out = sigma4 * SIGMA_DATA / jnp.sqrt(sigma4 ** 2 + sd2)
    c_in = 1.0 / jnp.sqrt(sd2 + sigma4 ** 2)
    c_noise = jnp.log(sigma4) / 4.0
    arg = jnp.concatenate([c_in * x, lr.astype(jnp.float32)], axis=1)   # _scaling_fn
    w_full = jnp.concatenate([wx, wlr], axis=0)                          # (Cx+Clr, Cx)
    fx = (jnp.einsum("nchw,cd->ndhw", arg, w_full,
                     precision=jax.lax.Precision.HIGHEST)
          + bias.reshape(1, -1, 1, 1)
          + c_noise * temb.reshape(1, -1, 1, 1))
    return c_skip * x + c_out * fx


if __name__ == "__main__":
    # Small shapes consistent with the module: batch=2, img_out_channels=4,
    # img_in_channels=4, img_resolution=16.
    N, C_OUT, C_IN, H, W = 2, 4, 4, 16, 16

    key = jax.random.PRNGKey(0)
    k_x, k_lr, k_sig, k_wx, k_wlr, k_b, k_t = jax.random.split(key, 7)

    x = jax.random.normal(k_x, (N, C_OUT, H, W), dtype=jnp.float32)
    img_lr = jax.random.normal(k_lr, (N, C_IN, H, W), dtype=jnp.float32)
    sigma = jnp.exp(jax.random.uniform(k_sig, (N,), minval=-1.0, maxval=1.0)).astype(jnp.float32)

    # Deterministic synthetic "model" parameters (1x1 conv + bias + noise-level embedding).
    wx = 0.1 * jax.random.normal(k_wx, (C_OUT, C_OUT), dtype=jnp.float32)
    wlr = 0.1 * jax.random.normal(k_wlr, (C_IN, C_OUT), dtype=jnp.float32)
    bias = 0.1 * jax.random.normal(k_b, (C_OUT,), dtype=jnp.float32)
    temb = 0.1 * jax.random.normal(k_t, (C_OUT,), dtype=jnp.float32)

    d_x = edm_precond_sr(x, img_lr, sigma, wx, wlr, bias, temb)
    d_x = jax.block_until_ready(d_x)

    ref = edm_precond_sr_reference(x, img_lr, sigma, wx, wlr, bias, temb)
    assert d_x.shape == (N, C_OUT, H, W)
    assert d_x.dtype == jnp.float32
    assert jnp.allclose(d_x, ref, atol=1e-4, rtol=1e-4), "mismatch vs reference"

    print("KERNEL_OK")
</pallas_src>

<mosaic_0001>
module attributes {stable_mosaic.version = 11 : i64} {
  func.func @_edm_precond_kernel(%arg0: i32, %arg1: i32, %arg2: memref<32xf32, #tpu.memory_space<smem>>, %arg3: memref<32xf32, #tpu.memory_space<smem>>, %arg4: memref<8xf32, #tpu.memory_space<smem>>, %arg5: memref<1x4x2x128xf32, #tpu.memory_space<vmem>>, %arg6: memref<1x4x2x128xf32, #tpu.memory_space<vmem>>, %arg7: memref<1x4x2x128xf32, #tpu.memory_space<vmem>>) attributes {dimension_semantics = [#tpu.dimension_semantics<parallel>, #tpu.dimension_semantics<parallel>], iteration_bounds = array<i64: 2, 1>, scalar_prefetch = 0 : i64, scratch_operands = 0 : i64, tpu.core_type = #tpu.core_type<tc>, window_params = [{transform_indices = @transform_0, window_bounds = array<i64: 32>}, {transform_indices = @transform_1, window_bounds = array<i64: 32>}, {transform_indices = @transform_2, window_bounds = array<i64: 8>}, {transform_indices = @transform_3, window_bounds = array<i64: 1, 4, 2, 128>}, {transform_indices = @transform_4, window_bounds = array<i64: 1, 4, 2, 128>}, {transform_indices = @transform_5, window_bounds = array<i64: 1, 4, 2, 128>}]} {
    %c16_i32 = arith.constant 16 : i32
    %0 = arith.muli %arg0, %c16_i32 : i32
    %c16_i32_0 = arith.constant 16 : i32
    %1 = arith.muli %arg0, %c16_i32_0 : i32
    %c4_i32 = arith.constant 4 : i32
    %2 = arith.muli %arg0, %c4_i32 : i32
    %c0_i32 = arith.constant 0 : i32
    %3 = arith.addi %0, %c0_i32 : i32
    %c0_i32_1 = arith.constant 0 : i32
    %4 = arith.addi %3, %c0_i32_1 : i32
    %5 = arith.index_cast %4 : i32 to index
    %6 = memref.load %arg2[%5] : memref<32xf32, #tpu.memory_space<smem>>
    %c0_i32_2 = arith.constant 0 : i32
    %7 = arith.addi %0, %c0_i32_2 : i32
    %c1_i32 = arith.constant 1 : i32
    %8 = arith.addi %7, %c1_i32 : i32
    %9 = arith.index_cast %8 : i32 to index
    %10 = memref.load %arg2[%9] : memref<32xf32, #tpu.memory_space<smem>>
    %c0_i32_3 = arith.constant 0 : i32
    %11 = arith.addi %0, %c0_i32_3 : i32
    %c2_i32 = arith.constant 2 : i32
    %12 = arith.addi %11, %c2_i32 : i32
    %13 = arith.index_cast %12 : i32 to index
    %14 = memref.load %arg2[%13] : memref<32xf32, #tpu.memory_space<smem>>
    %c0_i32_4 = arith.constant 0 : i32
    %15 = arith.addi %0, %c0_i32_4 : i32
    %c3_i32 = arith.constant 3 : i32
    %16 = arith.addi %15, %c3_i32 : i32
    %17 = arith.index_cast %16 : i32 to index
    %18 = memref.load %arg2[%17] : memref<32xf32, #tpu.memory_space<smem>>
    %c4_i32_5 = arith.constant 4 : i32
    %19 = arith.addi %0, %c4_i32_5 : i32
    %c0_i32_6 = arith.constant 0 : i32
    %20 = arith.addi %19, %c0_i32_6 : i32
    %21 = arith.index_cast %20 : i32 to index
    %22 = memref.load %arg2[%21] : memref<32xf32, #tpu.memory_space<smem>>
    %c4_i32_7 = arith.constant 4 : i32
    %23 = arith.addi %0, %c4_i32_7 : i32
    %c1_i32_8 = arith.constant 1 : i32
    %24 = arith.addi %23, %c1_i32_8 : i32
    %25 = arith.index_cast %24 : i32 to index
    %26 = memref.load %arg2[%25] : memref<32xf32, #tpu.memory_space<smem>>
    %c4_i32_9 = arith.constant 4 : i32
    %27 = arith.addi %0, %c4_i32_9 : i32
    %c2_i32_10 = arith.constant 2 : i32
    %28 = arith.addi %27, %c2_i32_10 : i32
    %29 = arith.index_cast %28 : i32 to index
    %30 = memref.load %arg2[%29] : memref<32xf32, #tpu.memory_space<smem>>
    %c4_i32_11 = arith.constant 4 : i32
    %31 = arith.addi %0, %c4_i32_11 : i32
    %c3_i32_12 = arith.constant 3 : i32
    %32 = arith.addi %31, %c3_i32_12 : i32
    %33 = arith.index_cast %32 : i32 to index
    %34 = memref.load %arg2[%33] : memref<32xf32, #tpu.memory_space<smem>>
    %c8_i32 = arith.constant 8 : i32
    %35 = arith.addi %0, %c8_i32 : i32
    %c0_i32_13 = arith.constant 0 : i32
    %36 = arith.addi %35, %c0_i32_13 : i32
    %37 = arith.index_cast %36 : i32 to index
    %38 = memref.load %arg2[%37] : memref<32xf32, #tpu.memory_space<smem>>
    %c8_i32_14 = arith.constant 8 : i32
    %39 = arith.addi %0, %c8_i32_14 : i32
    %c1_i32_15 = arith.constant 1 : i32
    %40 = arith.addi %39, %c1_i32_15 : i32
    %41 = arith.index_cast %40 : i32 to index
    %42 = memref.load %arg2[%41] : memref<32xf32, #tpu.memory_space<smem>>
    %c8_i32_16 = arith.constant 8 : i32
    %43 = arith.addi %0, %c8_i32_16 : i32
    %c2_i32_17 = arith.constant 2 : i32
    %44 = arith.addi %43, %c2_i32_17 : i32
    %45 = arith.index_cast %44 : i32 to index
    %46 = memref.load %arg2[%45] : memref<32xf32, #tpu.memory_space<smem>>
    %c8_i32_18 = arith.constant 8 : i32
    %47 = arith.addi %0, %c8_i32_18 : i32
    %c3_i32_19 = arith.constant 3 : i32
    %48 = arith.addi %47, %c3_i32_19 : i32
    %49 = arith.index_cast %48 : i32 to index
    %50 = memref.load %arg2[%49] : memref<32xf32, #tpu.memory_space<smem>>
    %c12_i32 = arith.constant 12 : i32
    %51 = arith.addi %0, %c12_i32 : i32
    %c0_i32_20 = arith.constant 0 : i32
    %52 = arith.addi %51, %c0_i32_20 : i32
    %53 = arith.index_cast %52 : i32 to index
    %54 = memref.load %arg2[%53] : memref<32xf32, #tpu.memory_space<smem>>
    %c12_i32_21 = arith.constant 12 : i32
    %55 = arith.addi %0, %c12_i32_21 : i32
    %c1_i32_22 = arith.constant 1 : i32
    %56 = arith.addi %55, %c1_i32_22 : i32
    %57 = arith.index_cast %56 : i32 to index
    %58 = memref.load %arg2[%57] : memref<32xf32, #tpu.memory_space<smem>>
    %c12_i32_23 = arith.constant 12 : i32
    %59 = arith.addi %0, %c12_i32_23 : i32
    %c2_i32_24 = arith.constant 2 : i32
    %60 = arith.addi %59, %c2_i32_24 : i32
    %61 = arith.index_cast %60 : i32 to index
    %62 = memref.load %arg2[%61] : memref<32xf32, #tpu.memory_space<smem>>
    %c12_i32_25 = arith.constant 12 : i32
    %63 = arith.addi %0, %c12_i32_25 : i32
    %c3_i32_26 = arith.constant 3 : i32
    %64 = arith.addi %63, %c3_i32_26 : i32
    %65 = arith.index_cast %64 : i32 to index
    %66 = memref.load %arg2[%65] : memref<32xf32, #tpu.memory_space<smem>>
    %c0_i32_27 = arith.constant 0 : i32
    %67 = arith.addi %1, %c0_i32_27 : i32
    %c0_i32_28 = arith.constant 0 : i32
    %68 = arith.addi %67, %c0_i32_28 : i32
    %69 = arith.index_cast %68 : i32 to index
    %70 = memref.load %arg3[%69] : memref<32xf32, #tpu.memory_space<smem>>
    %c0_i32_29 = arith.constant 0 : i32
    %71 = arith.addi %1, %c0_i32_29 : i32
    %c1_i32_30 = arith.constant 1 : i32
    %72 = arith.addi %71, %c1_i32_30 : i32
    %73 = arith.index_cast %72 : i32 to index
    %74 = memref.load %arg3[%73] : memref<32xf32, #tpu.memory_space<smem>>
    %c0_i32_31 = arith.constant 0 : i32
    %75 = arith.addi %1, %c0_i32_31 : i32
    %c2_i32_32 = arith.constant 2 : i32
    %76 = arith.addi %75, %c2_i32_32 : i32
    %77 = arith.index_cast %76 : i32 to index
    %78 = memref.load %arg3[%77] : memref<32xf32, #tpu.memory_space<smem>>
    %c0_i32_33 = arith.constant 0 : i32
    %79 = arith.addi %1, %c0_i32_33 : i32
    %c3_i32_34 = arith.constant 3 : i32
    %80 = arith.addi %79, %c3_i32_34 : i32
    %81 = arith.index_cast %80 : i32 to index
    %82 = memref.load %arg3[%81] : memref<32xf32, #tpu.memory_space<smem>>
    %c4_i32_35 = arith.constant 4 : i32
    %83 = arith.addi %1, %c4_i32_35 : i32
    %c0_i32_36 = arith.constant 0 : i32
    %84 = arith.addi %83, %c0_i32_36 : i32
    %85 = arith.index_cast %84 : i32 to index
    %86 = memref.load %arg3[%85] : memref<32xf32, #tpu.memory_space<smem>>
    %c4_i32_37 = arith.constant 4 : i32
    %87 = arith.addi %1, %c4_i32_37 : i32
    %c1_i32_38 = arith.constant 1 : i32
    %88 = arith.addi %87, %c1_i32_38 : i32
    %89 = arith.index_cast %88 : i32 to index
    %90 = memref.load %arg3[%89] : memref<32xf32, #tpu.memory_space<smem>>
    %c4_i32_39 = arith.constant 4 : i32
    %91 = arith.addi %1, %c4_i32_39 : i32
    %c2_i32_40 = arith.constant 2 : i32
    %92 = arith.addi %91, %c2_i32_40 : i32
    %93 = arith.index_cast %92 : i32 to index
    %94 = memref.load %arg3[%93] : memref<32xf32, #tpu.memory_space<smem>>
    %c4_i32_41 = arith.constant 4 : i32
    %95 = arith.addi %1, %c4_i32_41 : i32
    %c3_i32_42 = arith.constant 3 : i32
    %96 = arith.addi %95, %c3_i32_42 : i32
    %97 = arith.index_cast %96 : i32 to index
    %98 = memref.load %arg3[%97] : memref<32xf32, #tpu.memory_space<smem>>
    %c8_i32_43 = arith.constant 8 : i32
    %99 = arith.addi %1, %c8_i32_43 : i32
    %c0_i32_44 = arith.constant 0 : i32
    %100 = arith.addi %99, %c0_i32_44 : i32
    %101 = arith.index_cast %100 : i32 to index
    %102 = memref.load %arg3[%101] : memref<32xf32, #tpu.memory_space<smem>>
    %c8_i32_45 = arith.constant 8 : i32
    %103 = arith.addi %1, %c8_i32_45 : i32
    %c1_i32_46 = arith.constant 1 : i32
    %104 = arith.addi %103, %c1_i32_46 : i32
    %105 = arith.index_cast %104 : i32 to index
    %106 = memref.load %arg3[%105] : memref<32xf32, #tpu.memory_space<smem>>
    %c8_i32_47 = arith.constant 8 : i32
    %107 = arith.addi %1, %c8_i32_47 : i32
    %c2_i32_48 = arith.constant 2 : i32
    %108 = arith.addi %107, %c2_i32_48 : i32
    %109 = arith.index_cast %108 : i32 to index
    %110 = memref.load %arg3[%109] : memref<32xf32, #tpu.memory_space<smem>>
    %c8_i32_49 = arith.constant 8 : i32
    %111 = arith.addi %1, %c8_i32_49 : i32
    %c3_i32_50 = arith.constant 3 : i32
    %112 = arith.addi %111, %c3_i32_50 : i32
    %113 = arith.index_cast %112 : i32 to index
    %114 = memref.load %arg3[%113] : memref<32xf32, #tpu.memory_space<smem>>
    %c12_i32_51 = arith.constant 12 : i32
    %115 = arith.addi %1, %c12_i32_51 : i32
    %c0_i32_52 = arith.constant 0 : i32
    %116 = arith.addi %115, %c0_i32_52 : i32
    %117 = arith.index_cast %116 : i32 to index
    %118 = memref.load %arg3[%117] : memref<32xf32, #tpu.memory_space<smem>>
    %c12_i32_53 = arith.constant 12 : i32
    %119 = arith.addi %1, %c12_i32_53 : i32
    %c1_i32_54 = arith.constant 1 : i32
    %120 = arith.addi %119, %c1_i32_54 : i32
    %121 = arith.index_cast %120 : i32 to index
    %122 = memref.load %arg3[%121] : memref<32xf32, #tpu.memory_space<smem>>
    %c12_i32_55 = arith.constant 12 : i32
    %123 = arith.addi %1, %c12_i32_55 : i32
    %c2_i32_56 = arith.constant 2 : i32
    %124 = arith.addi %123, %c2_i32_56 : i32
    %125 = arith.index_cast %124 : i32 to index
    %126 = memref.load %arg3[%125] : memref<32xf32, #tpu.memory_space<smem>>
    %c12_i32_57 = arith.constant 12 : i32
    %127 = arith.addi %1, %c12_i32_57 : i32
    %c3_i32_58 = arith.constant 3 : i32
    %128 = arith.addi %127, %c3_i32_58 : i32
    %129 = arith.index_cast %128 : i32 to index
    %130 = memref.load %arg3[%129] : memref<32xf32, #tpu.memory_space<smem>>
    %c0_i32_59 = arith.constant 0 : i32
    %131 = arith.addi %2, %c0_i32_59 : i32
    %132 = arith.index_cast %131 : i32 to index
    %133 = memref.load %arg4[%132] : memref<8xf32, #tpu.memory_space<smem>>
    %c1_i32_60 = arith.constant 1 : i32
    %134 = arith.addi %2, %c1_i32_60 : i32
    %135 = arith.index_cast %134 : i32 to index
    %136 = memref.load %arg4[%135] : memref<8xf32, #tpu.memory_space<smem>>
    %c2_i32_61 = arith.constant 2 : i32
    %137 = arith.addi %2, %c2_i32_61 : i32
    %138 = arith.index_cast %137 : i32 to index
    %139 = memref.load %arg4[%138] : memref<8xf32, #tpu.memory_space<smem>>
    %c3_i32_62 = arith.constant 3 : i32
    %140 = arith.addi %2, %c3_i32_62 : i32
    %141 = arith.index_cast %140 : i32 to index
    %142 = memref.load %arg4[%141] : memref<8xf32, #tpu.memory_space<smem>>
    %c0 = arith.constant 0 : index
    %c0_63 = arith.constant 0 : index
    %c0_64 = arith.constant 0 : index
    %c0_65 = arith.constant 0 : index
    %143 = vector.load %arg5[%c0, %c0_63, %c0_64, %c0_65] : memref<1x4x2x128xf32, #tpu.memory_space<vmem>>, vector<1x1x2x128xf32>
    %144 = vector.shape_cast %143 : vector<1x1x2x128xf32> to vector<2x128xf32>
    %c0_66 = arith.constant 0 : index
    %c1 = arith.constant 1 : index
    %c0_67 = arith.constant 0 : index
    %c0_68 = arith.constant 0 : index
    %145 = vector.load %arg5[%c0_66, %c1, %c0_67, %c0_68] : memref<1x4x2x128xf32, #tpu.memory_space<vmem>>, vector<1x1x2x128xf32>
    %146 = vector.shape_cast %145 : vector<1x1x2x128xf32> to vector<2x128xf32>
    %c0_69 = arith.constant 0 : index
    %c2 = arith.constant 2 : index
    %c0_70 = arith.constant 0 : index
    %c0_71 = arith.constant 0 : index
    %147 = vector.load %arg5[%c0_69, %c2, %c0_70, %c0_71] : memref<1x4x2x128xf32, #tpu.memory_space<vmem>>, vector<1x1x2x128xf32>
    %148 = vector.shape_cast %147 : vector<1x1x2x128xf32> to vector<2x128xf32>
    %c0_72 = arith.constant 0 : index
    %c3 = arith.constant 3 : index
    %c0_73 = arith.constant 0 : index
    %c0_74 = arith.constant 0 : index
    %149 = vector.load %arg5[%c0_72, %c3, %c0_73, %c0_74] : memref<1x4x2x128xf32, #tpu.memory_space<vmem>>, vector<1x1x2x128xf32>
    %150 = vector.shape_cast %149 : vector<1x1x2x128xf32> to vector<2x128xf32>
    %c0_75 = arith.constant 0 : index
    %c0_76 = arith.constant 0 : index
    %c0_77 = arith.constant 0 : index
    %c0_78 = arith.constant 0 : index
    %151 = vector.load %arg6[%c0_75, %c0_76, %c0_77, %c0_78] : memref<1x4x2x128xf32, #tpu.memory_space<vmem>>, vector<1x1x2x128xf32>
    %152 = vector.shape_cast %151 : vector<1x1x2x128xf32> to vector<2x128xf32>
    %c0_79 = arith.constant 0 : index
    %c1_80 = arith.constant 1 : index
    %c0_81 = arith.constant 0 : index
    %c0_82 = arith.constant 0 : index
    %153 = vector.load %arg6[%c0_79, %c1_80, %c0_81, %c0_82] : memref<1x4x2x128xf32, #tpu.memory_space<vmem>>, vector<1x1x2x128xf32>
    %154 = vector.shape_cast %153 : vector<1x1x2x128xf32> to vector<2x128xf32>
    %c0_83 = arith.constant 0 : index
    %c2_84 = arith.constant 2 : index
    %c0_85 = arith.constant 0 : index
    %c0_86 = arith.constant 0 : index
    %155 = vector.load %arg6[%c0_83, %c2_84, %c0_85, %c0_86] : memref<1x4x2x128xf32, #tpu.memory_space<vmem>>, vector<1x1x2x128xf32>
    %156 = vector.shape_cast %155 : vector<1x1x2x128xf32> to vector<2x128xf32>
    %c0_87 = arith.constant 0 : index
    %c3_88 = arith.constant 3 : index
    %c0_89 = arith.constant 0 : index
    %c0_90 = arith.constant 0 : index
    %157 = vector.load %arg6[%c0_87, %c3_88, %c0_89, %c0_90] : memref<1x4x2x128xf32, #tpu.memory_space<vmem>>, vector<1x1x2x128xf32>
    %158 = vector.shape_cast %157 : vector<1x1x2x128xf32> to vector<2x128xf32>
    %159 = vector.broadcast %6 : f32 to vector<2x128xf32>
    %160 = arith.mulf %144, %159 : vector<2x128xf32>
    %161 = vector.broadcast %133 : f32 to vector<2x128xf32>
    %162 = arith.addf %160, %161 : vector<2x128xf32>
    %163 = vector.broadcast %22 : f32 to vector<2x128xf32>
    %164 = arith.mulf %146, %163 : vector<2x128xf32>
    %165 = arith.addf %162, %164 : vector<2x128xf32>
    %166 = vector.broadcast %38 : f32 to vector<2x128xf32>
    %167 = arith.mulf %148, %166 : vector<2x128xf32>
    %168 = arith.addf %165, %167 : vector<2x128xf32>
    %169 = vector.broadcast %54 : f32 to vector<2x128xf32>
    %170 = arith.mulf %150, %169 : vector<2x128xf32>
    %171 = arith.addf %168, %170 : vector<2x128xf32>
    %172 = vector.broadcast %70 : f32 to vector<2x128xf32>
    %173 = arith.mulf %152, %172 : vector<2x128xf32>
    %174 = arith.addf %171, %173 : vector<2x128xf32>
    %175 = vector.broadcast %86 : f32 to vector<2x128xf32>
    %176 = arith.mulf %154, %175 : vector<2x128xf32>
    %177 = arith.addf %174, %176 : vector<2x128xf32>
    %178 = vector.broadcast %102 : f32 to vector<2x128xf32>
    %179 = arith.mulf %156, %178 : vector<2x128xf32>
    %180 = arith.addf %177, %179 : vector<2x128xf32>
    %181 = vector.broadcast %118 : f32 to vector<2x128xf32>
    %182 = arith.mulf %158, %181 : vector<2x128xf32>
    %183 = arith.addf %180, %182 : vector<2x128xf32>
    %c0_91 = arith.constant 0 : index
    %c0_92 = arith.constant 0 : index
    %c0_93 = arith.constant 0 : index
    %c0_94 = arith.constant 0 : index
    %184 = vector.load %arg7[%c0_91, %c0_92, %c0_93, %c0_94] : memref<1x4x2x128xf32, #tpu.memory_space<vmem>>, vector<1x1x2x128xf32>
    %185 = vector.shape_cast %184 : vector<1x1x2x128xf32> to vector<2x128xf32>
    %186 = vector.shape_cast %183 : vector<2x128xf32> to vector<1x1x2x128xf32>
    tpu.vector_store %arg7[%c0_91, %c0_92, %c0_93, %c0_94], %186 {strides = array<i32>} : memref<1x4x2x128xf32, #tpu.memory_space<vmem>>, vector<1x1x2x128xf32>,
    %187 = vector.broadcast %10 : f32 to vector<2x128xf32>
    %188 = arith.mulf %144, %187 : vector<2x128xf32>
    %189 = vector.broadcast %136 : f32 to vector<2x128xf32>
    %190 = arith.addf %188, %189 : vector<2x128xf32>
    %191 = vector.broadcast %26 : f32 to vector<2x128xf32>
    %192 = arith.mulf %146, %191 : vector<2x128xf32>
    %193 = arith.addf %190, %192 : vector<2x128xf32>
    %194 = vector.broadcast %42 : f32 to vector<2x128xf32>
    %195 = arith.mulf %148, %194 : vector<2x128xf32>
    %196 = arith.addf %193, %195 : vector<2x128xf32>
    %197 = vector.broadcast %58 : f32 to vector<2x128xf32>
    %198 = arith.mulf %150, %197 : vector<2x128xf32>
    %199 = arith.addf %196, %198 : vector<2x128xf32>
    %200 = vector.broadcast %74 : f32 to vector<2x128xf32>
    %201 = arith.mulf %152, %200 : vector<2x128xf32>
    %202 = arith.addf %199, %201 : vector<2x128xf32>
    %203 = vector.broadcast %90 : f32 to vector<2x128xf32>
    %204 = arith.mulf %154, %203 : vector<2x128xf32>
    %205 = arith.addf %202, %204 : vector<2x128xf32>
    %206 = vector.broadcast %106 : f32 to vector<2x128xf32>
    %207 = arith.mulf %156, %206 : vector<2x128xf32>
    %208 = arith.addf %205, %207 : vector<2x128xf32>
    %209 = vector.broadcast %122 : f32 to vector<2x128xf32>
    %210 = arith.mulf %158, %209 : vector<2x128xf32>
    %211 = arith.addf %208, %210 : vector<2x128xf32>
    %c0_95 = arith.constant 0 : index
    %c1_96 = arith.constant 1 : index
    %c0_97 = arith.constant 0 : index
    %c0_98 = arith.constant 0 : index
    %212 = vector.load %arg7[%c0_95, %c1_96, %c0_97, %c0_98] : memref<1x4x2x128xf32, #tpu.memory_space<vmem>>, vector<1x1x2x128xf32>
    %213 = vector.shape_cast %212 : vector<1x1x2x128xf32> to vector<2x128xf32>
    %214 = vector.shape_cast %211 : vector<2x128xf32> to vector<1x1x2x128xf32>
    tpu.vector_store %arg7[%c0_95, %c1_96, %c0_97, %c0_98], %214 {strides = array<i32>} : memref<1x4x2x128xf32, #tpu.memory_space<vmem>>, vector<1x1x2x128xf32>,
    %215 = vector.broadcast %14 : f32 to vector<2x128xf32>
    %216 = arith.mulf %144, %215 : vector<2x128xf32>
    %217 = vector.broadcast %139 : f32 to vector<2x128xf32>
    %218 = arith.addf %216, %217 : vector<2x128xf32>
    %219 = vector.broadcast %30 : f32 to vector<2x128xf32>
    %220 = arith.mulf %146, %219 : vector<2x128xf32>
    %221 = arith.addf %218, %220 : vector<2x128xf32>
    %222 = vector.broadcast %46 : f32 to vector<2x128xf32>
    %223 = arith.mulf %148, %222 : vector<2x128xf32>
    %224 = arith.addf %221, %223 : vector<2x128xf32>
    %225 = vector.broadcast %62 : f32 to vector<2x128xf32>
    %226 = arith.mulf %150, %225 : vector<2x128xf32>
    %227 = arith.addf %224, %226 : vector<2x128xf32>
    %228 = vector.broadcast %78 : f32 to vector<2x128xf32>
    %229 = arith.mulf %152, %228 : vector<2x128xf32>
    %230 = arith.addf %227, %229 : vector<2x128xf32>
    %231 = vector.broadcast %94 : f32 to vector<2x128xf32>
    %232 = arith.mulf %154, %231 : vector<2x128xf32>
    %233 = arith.addf %230, %232 : vector<2x128xf32>
    %234 = vector.broadcast %110 : f32 to vector<2x128xf32>
    %235 = arith.mulf %156, %234 : vector<2x128xf32>
    %236 = arith.addf %233, %235 : vector<2x128xf32>
    %237 = vector.broadcast %126 : f32 to vector<2x128xf32>
    %238 = arith.mulf %158, %237 : vector<2x128xf32>
    %239 = arith.addf %236, %238 : vector<2x128xf32>
    %c0_99 = arith.constant 0 : index
    %c2_100 = arith.constant 2 : index
    %c0_101 = arith.constant 0 : index
    %c0_102 = arith.constant 0 : index
    %240 = vector.load %arg7[%c0_99, %c2_100, %c0_101, %c0_102] : memref<1x4x2x128xf32, #tpu.memory_space<vmem>>, vector<1x1x2x128xf32>
    %241 = vector.shape_cast %240 : vector<1x1x2x128xf32> to vector<2x128xf32>
    %242 = vector.shape_cast %239 : vector<2x128xf32> to vector<1x1x2x128xf32>
    tpu.vector_store %arg7[%c0_99, %c2_100, %c0_101, %c0_102], %242 {strides = array<i32>} : memref<1x4x2x128xf32, #tpu.memory_space<vmem>>, vector<1x1x2x128xf32>,
    %243 = vector.broadcast %18 : f32 to vector<2x128xf32>
    %244 = arith.mulf %144, %243 : vector<2x128xf32>
    %245 = vector.broadcast %142 : f32 to vector<2x128xf32>
    %246 = arith.addf %244, %245 : vector<2x128xf32>
    %247 = vector.broadcast %34 : f32 to vector<2x128xf32>
    %248 = arith.mulf %146, %247 : vector<2x128xf32>
    %249 = arith.addf %246, %248 : vector<2x128xf32>
    %250 = vector.broadcast %50 : f32 to vector<2x128xf32>
    %251 = arith.mulf %148, %250 : vector<2x128xf32>
    %252 = arith.addf %249, %251 : vector<2x128xf32>
    %253 = vector.broadcast %66 : f32 to vector<2x128xf32>
    %254 = arith.mulf %150, %253 : vector<2x128xf32>
    %255 = arith.addf %252, %254 : vector<2x128xf32>
    %256 = vector.broadcast %82 : f32 to vector<2x128xf32>
    %257 = arith.mulf %152, %256 : vector<2x128xf32>
    %258 = arith.addf %255, %257 : vector<2x128xf32>
    %259 = vector.broadcast %98 : f32 to vector<2x128xf32>
    %260 = arith.mulf %154, %259 : vector<2x128xf32>
    %261 = arith.addf %258, %260 : vector<2x128xf32>
    %262 = vector.broadcast %114 : f32 to vector<2x128xf32>
    %263 = arith.mulf %156, %262 : vector<2x128xf32>
    %264 = arith.addf %261, %263 : vector<2x128xf32>
    %265 = vector.broadcast %130 : f32 to vector<2x128xf32>
    %266 = arith.mulf %158, %265 : vector<2x128xf32>
    %267 = arith.addf %264, %266 : vector<2x128xf32>
    %c0_103 = arith.constant 0 : index
    %c3_104 = arith.constant 3 : index
    %c0_105 = arith.constant 0 : index
    %c0_106 = arith.constant 0 : index
    %268 = vector.load %arg7[%c0_103, %c3_104, %c0_105, %c0_106] : memref<1x4x2x128xf32, #tpu.memory_space<vmem>>, vector<1x1x2x128xf32>
    %269 = vector.shape_cast %268 : vector<1x1x2x128xf32> to vector<2x128xf32>
    %270 = vector.shape_cast %267 : vector<2x128xf32> to vector<1x1x2x128xf32>
    tpu.vector_store %arg7[%c0_103, %c3_104, %c0_105, %c0_106], %270 {strides = array<i32>} : memref<1x4x2x128xf32, #tpu.memory_space<vmem>>, vector<1x1x2x128xf32>,
    return
  }
  func.func @transform_0(%arg0: i32, %arg1: i32) -> i32 {
    %c0_i32 = arith.constant 0 : i32
    %c0_i32_0 = arith.constant 0 : i32
    return %c0_i32 : i32
  }
  func.func @transform_1(%arg0: i32, %arg1: i32) -> i32 {
    %c0_i32 = arith.constant 0 : i32
    %c0_i32_0 = arith.constant 0 : i32
    return %c0_i32 : i32
  }
  func.func @transform_2(%arg0: i32, %arg1: i32) -> i32 {
    %c0_i32 = arith.constant 0 : i32
    %c0_i32_0 = arith.constant 0 : i32
    return %c0_i32 : i32
  }
  func.func @transform_3(%arg0: i32, %arg1: i32) -> (i32, i32, i32, i32) {
    %c0_i32 = arith.constant 0 : i32
    %c0_i32_0 = arith.constant 0 : i32
    %c0_i32_1 = arith.constant 0 : i32
    return %arg0, %c0_i32, %arg1, %c0_i32_0 : i32, i32, i32, i32
  }
  func.func @transform_4(%arg0: i32, %arg1: i32) -> (i32, i32, i32, i32) {
    %c0_i32 = arith.constant 0 : i32
    %c0_i32_0 = arith.constant 0 : i32
    %c0_i32_1 = arith.constant 0 : i32
    return %arg0, %c0_i32, %arg1, %c0_i32_0 : i32, i32, i32, i32
  }
  func.func @transform_5(%arg0: i32, %arg1: i32) -> (i32, i32, i32, i32) {
    %c0_i32 = arith.constant 0 : i32
    %c0_i32_0 = arith.constant 0 : i32
    %c0_i32_1 = arith.constant 0 : i32
    return %arg0, %c0_i32, %arg1, %c0_i32_0 : i32, i32, i32, i32
  }
}

</mosaic_0001>

<bundles_post_ra>
// kernel: tpu_custom_call.1
= control target key start
LH: loop header
LB: loop body
LE: loop exit
PB: predicated region body
PF: predicated region fallthrough
CT: control target
= control target key end

     0   :  { %s1590_s0 = inlined_call_operand.hbm [shape: f32[32], index: 0, kind: input, shape index: {}]   ;;  %s1591_s1 = inlined_call_operand.vmem [shape: f32[32], index: 1, kind: input, shape index: {}]   ;;  %s1592_s2 = inlined_call_operand.vmem [shape: f32[8], index: 2, kind: input, shape index: {}]   ;;  %s1593_s3 = inlined_call_operand.hbm [shape: f32[2,4,2,128], index: 3, kind: input, shape index: {}]   ;;  %s1594_s4 = inlined_call_operand.hbm [shape: f32[2,4,2,128], index: 4, kind: input, shape index: {}]   ;;  %s1595_s5 = inlined_call_operand.hbm [shape: f32[2,4,2,128], index: 5, kind: output, shape index: {}]  }
   0x1   :  { %1606 = sst [smem:[#allocation23_spill]] %s1590_s0 }
   0x2   :  { %1607 = sst [smem:[#allocation24_spill]] %s1591_s1 }
   0x3   :  { %1608 = sst [smem:[#allocation25_spill]] %s1592_s2 }
   0x4   :  { %1609 = sst [smem:[#allocation26_spill]] %s1593_s3 }
   0x5   :  { %1610 = sst [smem:[#allocation27_spill]] %s1594_s4 }
   0x6   :  { %10 = vsyncpa [#allocation5], 0 }
   0x7   :  { %11 = vsyncpa [#allocation6], 0 }
   0x8   :  { %12 = vsyncpa [#allocation9], 0 }
   0x9   :  { %13 = vsyncpa [#allocation3], 0 }
   0xa   :  { %15 = vsyncpa [#allocation3 + $0x1], 0 }
   0xb   :  { %16 = vsyncpa [#allocation12], 0 }
   0xc   :  { %18 = vsyncpa [#allocation12 + $0x1], 0 }
   0xd   :  { %19 = vsyncpa [#allocation4], 0 }
   0xe   :  { %21 = vsyncpa [#allocation4 + $0x1], 0  ;;  %s1061_s18 = smov 0   ;;  %s1063_s19 = smov 0  }
   0xf   :  { %s1065_s20 = smov 0   ;;  %s1067_s21 = smov 0  }
  0x10   :  { %s1069_s22 = smov 0   ;;  %s1071_s23 = smov 0  }
  0x11 LB: > { %1611 = sst [smem:[#allocation20_spill]] %s1015_s22  ;;  %s677_s24 = sadd.s32 4294967295, %s1019_s23   ;;  %s1019_s23 = sphi %s1071_s23, %s27_s23   ;;  %s1015_s22 = sphi %s1069_s22, %s1639_s22   ;;  %s1011_s21 = sphi %s1067_s21, %s1638_s21   ;;  %s1007_s20 = sphi %s1065_s20, %s1642_s20   ;;  %s1003_s19 = sphi %s1063_s19, %s1641_s19   ;;  %s999_s18 = sphi %s1061_s18, %s1640_s18  }
  0x12   : > { %s678_s25 = sadd.s32 4294967294, %s1019_s23   ;;  %p124_p0 = scmp.ne.s32.totalorder %s1003_s19, %s999_s18 }
  0x13   : > { %p1095_p1 = scmp.eq.s32.totalorder %s677_s24, 0  ;;  %p1099_p2 = scmp.eq.s32.totalorder %s677_s24, 1 }
  0x14   : > { %p184_p3 = scmp.eq.s32.totalorder %s678_s25, 1  ;;  %p679_p5 = scmp.ge.s32.totalorder %s1019_s23, 1 }
  0x15   : > { %s1612_s26 = scalar_select %p1095_p1, 1, 0 }
  0x16   : > { %p1105_p4 = por %p1095_p1, %p124_p0  ;;  %p1110_p6 = por %p184_p3, %p124_p0 }
  0x17   : > { %p191_p7 = scmp.lt.s32.totalorder %s1019_s23, 3  ;;  %s1617_s1 = sld [smem:[#allocation24_spill]] }
  0x18   : > { %s1614_s28 = scalar_select %p1105_p4, 1, 0 }
  0x19   : > { %s1615_s29 = scalar_select %p1110_p6, 1, 0 }
  0x1a   : > { %p1115_p8 = pnand %p679_p5, %p191_p7  ;;  %s1618_s2 = sld [smem:[#allocation25_spill]] }
  0x1b   : > { %s1620_s0 = sld [smem:[#allocation23_spill]] }
  0x1c   : > { %p734_p10 = pneg %p1115_p8 }
  0x1d   : > { %s213_s8 = sshll.u32 %s1617_s1, 4  ;;  %s214_s8 = int_to_ptr.vmem [resolvable:$true] %s213_s8 }
  0x1e   : > { %p1130_p11 = pnand %p734_p10, %p1095_p1 }
  0x20   : > { %s224_s11 = sshll.u32 %s1618_s2, 4  ;;  %p820_p13 = pneg %p1130_p11  ;;  %s1134_s11 = int_to_ptr.vmem [resolvable:$true] %s224_s11 }
  0x21   : > { %s818_s15 = scalar_lea.hbm %s1620_s0, 16 }
  0x22   : > { %p819_p12 = scmp.ne.s32.totalorder %s1620_s0, %s818_s15  ;;  %p825_p5 = scmp.lt.u32.totalorder %s818_s15, %s1620_s0 }
  0x24   : > { %p821_p0 = pnand %p820_p13, %p819_p12 }
  0x26   : > { %p822_p3 = pneg %p821_p0 }
  0x28   : > { %p827_p7 = pnand %p825_p5, %p822_p3 }
  0x2a   : > { %830 = shalt.err (!%p827_p7)
}
  0x2b   : > { %s1021_s6 = smov [#allocation2]   ;;  %s831_s10 = scalar_lea.vmem %s214_s8, 16 }
  0x2c   : > { %737 = dma.hbm_to_smem (!%p1130_p11), %s1620_s0, 16, %s1021_s6, [#allocation5]  }
  0x2d   : > { %p832_p10 = scmp.ne.s32.totalorder %s214_s8, %s831_s10  ;;  %p839_p9 = scmp.lt.s32.totalorder %s214_s8, %s214_s8 }
  0x2e   : > { %p840_p6 = scmp.lt.s32.totalorder %s831_s10, %s831_s10 }
  0x2f   : > { %p834_p12 = pnand %p832_p10, %p820_p13 }
  0x30   : > { %p841_p4 = por %p840_p6, %p839_p9 }
  0x31   : > { %p835_p0 = pneg %p834_p12 }
  0x33   : > { %p842_p1 = pnand %p841_p4, %p835_p0 }
  0x35   : > { %845 = shalt.err (!%p842_p1)
}
  0x36   : > { %s1022_s13 = smov [#allocation7]   ;;  %s846_s14 = scalar_lea.vmem %s1134_s11, 16 }
  0x37   : > { %740 = dma.vmem_to_smem (!%p1130_p11), %s214_s8, 16, %s1022_s13, [#allocation6]  }
  0x38   : > { %p847_p3 = scmp.ne.s32.totalorder %s1134_s11, %s846_s14  ;;  %p854_p10 = scmp.lt.s32.totalorder %s1134_s11, %s1134_s11 }
  0x39   : > { %p855_p12 = scmp.lt.s32.totalorder %s846_s14, %s846_s14 }
  0x3a   : > { %p849_p5 = pnand %p847_p3, %p820_p13 }
  0x3b   : > { %p856_p6 = por %p855_p12, %p854_p10 }
  0x3c   : > { %p850_p7 = pneg %p849_p5 }
  0x3e   : > { %p857_p4 = pnand %p856_p6, %p850_p7 }
  0x40   : > { %860 = shalt.err (!%p857_p4)
}
  0x41   : > { %s1023_s15 = smov [#allocation8]   ;;  %s39_s8 = sadd.s32 1, %s1015_s22 }
  0x42   : > { %743 = dma.vmem_to_smem (!%p1130_p11), %s1134_s11, 16, %s1023_s15, [#allocation9]  }
  0x43   : > { %p41_p1 = scmp.ge.s32.totalorder %s39_s8, 2  ;;  %s111_s16 = sadd.s32 1, %s1007_s20 }
  0x44   : > { %p118_p9 = scmp.ne.s32.totalorder %s1007_s20, %s1003_s19  ;;  %p119_p13 = scmp.eq.s32.totalorder %s1019_s23, 0 }
  0x45   : > { %s1644_s8 = smov (%p41_p1, %s39_s8), 0  ;;  %p758_p11 = scmp.lt.s32.totalorder %s1019_s23, 2 }
  0x46   : > { %1621 = sst [smem:[#allocation21_spill]] %s1644_s8  ;;  %p1177_p0 = por %p119_p13, %p118_p9 }
  0x47   : > { %p1183_p3 = por %p1099_p2, %p118_p9  ;;  %s106_s11 = ssub.s32 %s1015_s22, %s1644_s8 }
  0x48   : > { %p109_p5 = scmp.eq.s32.totalorder %s106_s11, 0  ;;  %s1191_s24 = sand.u32 1, %s1007_s20  }
  0x49   : > { %s1623_s17 = scalar_select %p1183_p3, 1, 0 }
  0x4a   : > { %s1599_s25 = sshll.u32 %s1191_s24, 3  ;;  %s1600_s7 = sshll.u32 %s1015_s22, 7 }
  0x4b   : > { %s1195_s6 = scalar_select %p109_p5, %s1007_s20, %s111_s16  }
  0x4c   : > { %s1625_s3 = sld [smem:[#allocation26_spill]]  ;;  %s239_s13 = scalar_lea.vmem [#allocation10], %s1599_s25 }
  0x4d   : > { %1624 = sst [smem:[#allocation22_spill]] %s1195_s6  ;;  %s247_s14 = sshll.u32 %s239_s13, 4  ;;  %s1207_s14 = int_to_ptr.vmem [resolvable:$true] %s247_s14 }
  0x4e   : > { %p1211_p2 = pnand %p758_p11, %p1177_p0  ;;  %s236_s16 = scalar_lea.sflag [#allocation3], %s1191_s24 }
  0x50   : > { %p863_p10 = pneg %p1211_p2 }
  0x52   : > { %s1203_s10 = scalar_lea.hbm %s1625_s3, %s1600_s7  ;;  %s866_s13 = scalar_lea.hbm %s1625_s3, 256 }
  0x53   : > { %s861_s11 = scalar_lea.hbm %s1203_s10, 128  ;;  %p867_p4 = scmp.lt.u32.totalorder %s1203_s10, %s1625_s3 }
  0x54   : > { %p862_p7 = scmp.ne.s32.totalorder %s1203_s10, %s861_s11  ;;  %p868_p1 = scmp.lt.u32.totalorder %s866_s13, %s861_s11 }
  0x55   : > { %p870_p13 = scmp.lt.u32.totalorder %s861_s11, %s1203_s10 }
  0x56   : > { %p864_p12 = pnand %p863_p10, %p862_p7  ;;  %p869_p9 = por %p868_p1, %p867_p4 }
  0x58   : > { %p865_p6 = pneg %p864_p12  ;;  %p871_p0 = por %p870_p13, %p869_p9 }
  0x5a   : > { %p872_p11 = pnand %p871_p0, %p865_p6 }
  0x5c   : > { %875 = shalt.err (!%p872_p11)
}
  0x5d   : > { %s876_s7 = scalar_lea.vmem %s1207_s14, 128  ;;  %s1024_s9 = smov [#allocation10]  }
  0x5e   : > { %p877_p5 = scmp.ne.s32.totalorder %s1207_s14, %s876_s7  ;;  %s881_s27 = sshll.u32 %s1024_s9, 4  ;;  %s882_s27 = int_to_ptr.vmem [resolvable:$false] %s881_s27 }
  0x5f   : > { %s883_s25 = scalar_lea.vmem %s882_s27, 256  ;;  %p884_p3 = scmp.lt.s32.totalorder %s1207_s14, %s882_s27 }
  0x60   : > { %p879_p7 = pnand %p877_p5, %p863_p10  ;;  %p885_p4 = scmp.lt.s32.totalorder %s883_s25, %s876_s7 }
  0x62   : > { %p880_p12 = pneg %p879_p7  ;;  %p886_p1 = por %p885_p4, %p884_p3 }
  0x64   : > { %p887_p9 = pnand %p886_p1, %p880_p12 }
  0x66   : > { %890 = shalt.err (!%p887_p9)
}
  0x67   : > { %s1025_s11 = smov 32   ;;  %s1026_s13 = smov 2  }
  0x68   : > { %747 = dma.hbm_to_vmem [thread:$0]  (!%p1211_p2), %s1203_s10, 128, %s1207_s14, %s236_s16, %s1025_s11, %s1025_s11, %s1026_s13  }
  0x69   : > { %s1627_s7 = sshll.u32 %s1015_s22, 7  ;;  %s1628_s4 = sld [smem:[#allocation27_spill]] }
  0x6a   : > { %s1629_s25 = sshll.u32 %s1191_s24, 3  ;;  %s258_s2 = scalar_lea.sflag [#allocation12], %s1191_s24 }
  0x6b   : > { %s261_s0 = scalar_lea.vmem [#allocation11], %s1629_s25 }
  0x6c   : > { %s269_s1 = sshll.u32 %s261_s0, 4  ;;  %s1255_s1 = int_to_ptr.vmem [resolvable:$true] %s269_s1 }
  0x6f   : > { %s1251_s27 = scalar_lea.hbm %s1628_s4, %s1627_s7  ;;  %s896_s16 = scalar_lea.hbm %s1628_s4, 256 }
  0x70   : > { %s891_s3 = scalar_lea.hbm %s1251_s27, 128  ;;  %p897_p0 = scmp.lt.u32.totalorder %s1251_s27, %s1628_s4 }
  0x71   : > { %p892_p3 = scmp.ne.s32.totalorder %s1251_s27, %s891_s3  ;;  %p898_p11 = scmp.lt.u32.totalorder %s896_s16, %s891_s3 }
  0x72   : > { %p900_p7 = scmp.lt.u32.totalorder %s891_s3, %s1251_s27 }
  0x73   : > { %p894_p6 = pnand %p892_p3, %p863_p10  ;;  %p899_p5 = por %p898_p11, %p897_p0 }
  0x75   : > { %p895_p13 = pneg %p894_p6  ;;  %p901_p12 = por %p900_p7, %p899_p5 }
  0x77   : > { %p902_p4 = pnand %p901_p12, %p895_p13 }
  0x79   : > { %905 = shalt.err (!%p902_p4)
}
  0x7a   : > { %s906_s0 = scalar_lea.vmem %s1255_s1, 128  ;;  %s1027_s9 = smov [#allocation11]  }
  0x7b   : > { %p907_p1 = scmp.ne.s32.totalorder %s1255_s1, %s906_s0  ;;  %s911_s25 = sshll.u32 %s1027_s9, 4  ;;  %s912_s25 = int_to_ptr.vmem [resolvable:$false] %s911_s25 }
  0x7c   : > { %s913_s10 = scalar_lea.vmem %s912_s25, 256  ;;  %p914_p6 = scmp.lt.s32.totalorder %s1255_s1, %s912_s25 }
  0x7d   : > { %p909_p9 = pnand %p907_p1, %p863_p10  ;;  %p915_p0 = scmp.lt.s32.totalorder %s913_s10, %s906_s0 }
  0x7f   : > { %p910_p3 = pneg %p909_p9  ;;  %p916_p11 = por %p915_p0, %p914_p6 }
  0x81   : > { %p917_p5 = pnand %p916_p11, %p910_p3 }
  0x83   : > { %920 = shalt.err (!%p917_p5)
}
  0x84   : > { %750 = dma.hbm_to_vmem [thread:$0]  (!%p1211_p2), %s1251_s27, 128, %s1255_s1, %s258_s2, %s1025_s11, %s1025_s11, %s1026_s13  }
  0x85   : > { %281 = sbr.rel (%p1115_p8) target bundleno = 224 (0xe0), region = 40  ;;  %p1630_p10 = scmp.ne.s32.totalorder (!%p1115_p8), %s1612_s26, 0 }
  0x8c   : > { %974 = dma.done.wait (%p1630_p10), [#allocation5], 16  }
  0x8d   : > { %976 = vsyncadd (%p1630_p10), [#allocation5], 4294967280 }
  0x8e   : > { %978 = dma.done.wait (%p1630_p10), [#allocation6], 16  }
  0x8f   : > { %980 = vsyncadd (%p1630_p10), [#allocation6], 4294967280 }
  0x90   : > { %982 = dma.done.wait (%p1630_p10), [#allocation9], 16  }
  0x91   : > { %984 = vsyncadd (%p1630_p10), [#allocation9], 4294967280  ;;  %s1301_s1 = sand.u32 1, %s1003_s19   ;;  %p1631_p8 = scmp.ne.s32.totalorder %s1614_s28, 0 }
  0x92   : > { %s1304_s2 = sshll.u32 %s1301_s1, 3  ;;  %s296_s3 = scalar_lea.sflag [#allocation3], %s1301_s1 }
  0x93   : > { %s1308_s30 = scalar_lea.vmem [#allocation10], %s1304_s2 }
  0x94   : > { %986 = dma.done.wait (%p1631_p8), %s296_s3, 128  }
  0x95   : > { %988 = vsyncadd (%p1631_p8), %s296_s3, 4294967168  ;;  %s305_s26 = scalar_lea.sflag [#allocation12], %s1301_s1  ;;  %s1316_s24 = scalar_lea.vmem [#allocation11], %s1304_s2 }
  0x96   : > { %990 = dma.done.wait (%p1631_p8), %s305_s26, 128  }
  0x97   : > { %992 = vsyncadd (%p1631_p8), %s305_s26, 4294967168 }
  0x98   : > { %313 = sfence }
  0x99   : > { %s1323_s15 = sshll.u32 %s1011_s21, 4  ;;  %s1329_s16 = sshll.u32 %s1011_s21, 2  ;;  %v1341_v0 = vld [vmem:[%s1308_s30] sm:$0x3]  ;;  %v1347_v2 = vld [vmem:[%s1308_s30 + $0x2] sm:$0x3] }
  0x9a   : > { %s343_s11 = sld [smem:[#allocation2 + %s1323_s15]]  ;;  %s350_s13 = sadd.s32 4, %s1323_s15  ;;  %v1357_v5 = vld [vmem:[%s1308_s30 + $0x4] sm:$0x3]  ;;  %v1372_v8 = vld [vmem:[%s1308_s30 + $0x6] sm:$0x3] }
  0x9b   : > { %s358_s27 = sadd.s32 8, %s1323_s15  ;;  %s351_s14 = sld [smem:[#allocation2 + %s350_s13]]  ;;  %v1382_v13 = vld [vmem:[%s1316_s24] sm:$0x3]  ;;  %v1390_v16 = vld [vmem:[%s1316_s24 + $0x2] sm:$0x3] }
  0x9c   : > { %s359_s28 = sld [smem:[#allocation2 + %s358_s27]]  ;;  %s366_s7 = sadd.s32 12, %s1323_s15  ;;  %v1402_v21 = vld [vmem:[%s1316_s24 + $0x4] sm:$0x3]  ;;  %v1423_v28 = vld [vmem:[%s1316_s24 + $0x6] sm:$0x3] }
  0x9d   : > { %s1332_s12 = sld [smem:[#allocation2 + %s366_s7]]  ;;  %s344_s3 = sadd.s32 1, %s1323_s15 }
  0x9e   : > { %s1335_s0 = sld [smem:[#allocation7 + %s1323_s15]]  ;;  %s352_s4 = sadd.s32 5, %s1323_s15 }
  0x9f   : > { %s1337_s9 = sld [smem:[#allocation7 + %s350_s13]]  ;;  %s1604_s8 = sadd.s32 9, %s1323_s15 }
  0xa0   : > { %s390_s25 = sld [smem:[#allocation8 + %s1329_s16]]  ;;  %v411_v1 = vstv %s343_s11  ;;  %p1634_p13 = scmp.ne.s32.totalorder %s1623_s17, 0 }
  0xa1   : > { %s1343_s10 = sld [smem:[#allocation7 + %s358_s27]]  ;;  %v415_v3 = vstv %s351_s14  ;;  %v412_v4 = vmul.f32 %v411_v1, %v1341_v0  ;;  %s368_s27 = sadd.s32 13, %s1323_s15 }
  0xa2   : > { %s1349_s26 = sld [smem:[#allocation2 + %s344_s3]]  ;;  %v418_v6 = vstv %s359_s28  ;;  %v416_v7 = vmul.f32 %v1347_v2, %v415_v3 }
  0xa3   : > { %s1353_s13 = sld [smem:[#allocation2 + %s352_s4]]  ;;  %v421_v10 = vstv %s1332_s12  ;;  %v419_v12 = vmul.f32 %v1357_v5, %v418_v6  ;;  %s346_s12 = sadd.s32 2, %s1323_s15 }
  0xa4   : > { %s1361_s11 = sld [smem:[#allocation2 + %s1604_s8]]  ;;  %s391_s8 = sadd.s32 1, %s1329_s16  ;;  %v424_v14 = vstv %s1335_s0  ;;  %v422_v18 = vmul.f32 %v1372_v8, %v421_v10 }
  0xa5   : > { %s1364_s14 = sld [smem:[#allocation7 + %s366_s7]]  ;;  %v427_v19 = vstv %s1337_s9  ;;  %s354_s0 = sadd.s32 6, %s1323_s15  ;;  %v425_v23 = vmul.f32 %v424_v14, %v1382_v13 }
  0xa6   : > { %s1369_s22 = sld [smem:[#allocation2 + %s368_s27]]  ;;  %v413_v9 = vstv %s390_s25  ;;  %s362_s25 = sadd.s32 10, %s1323_s15  ;;  %v428_v26 = vmul.f32 %v1390_v16, %v427_v19 }
  0xa7   : > { %s1375_s28 = sld [smem:[#allocation7 + %s344_s3]]  ;;  %v414_v11 = vadd.f32 %v413_v9, %v412_v4  ;;  %v430_v24 = vstv %s1343_s10  ;;  %s370_s3 = sadd.s32 14, %s1323_s15 }
  0xa8   : > { %s1378_s7 = sld [smem:[#allocation7 + %s352_s4]]  ;;  %v437_v15 = vstv %s1349_s26  ;;  %s1632_s26 = sadd.s32 9, %s1323_s15  ;;  %v431_v33 = vmul.f32 %v1402_v21, %v430_v24 }
  0xa9   : > { %s1385_s30 = sld [smem:[#allocation8 + %s391_s8]]  ;;  %v417_v17 = vadd.f32 %v416_v7, %v414_v11  ;;  %v441_v20 = vstv %s1353_s13  ;;  %v438_v25 = vmul.f32 %v437_v15, %v1341_v0 }
  0xaa   : > { %s1394_s4 = sld [smem:[#allocation2 + %s346_s12]]  ;;  %v444_v27 = vstv %s1361_s11  ;;  %v442_v31 = vmul.f32 %v1347_v2, %v441_v20  ;;  %s393_s11 = sadd.s32 2, %s1329_s16 }
  0xab   : > { %s1398_s8 = sld [smem:[#allocation2 + %s354_s0]]  ;;  %v420_v22 = vadd.f32 %v419_v12, %v417_v17  ;;  %v433_v30 = vstv %s1364_s14  ;;  %v445_v37 = vmul.f32 %v1357_v5, %v444_v27 }
  0xac   : > { %s1409_s9 = sld [smem:[#allocation2 + %s362_s25]]  ;;  %v447_v32 = vstv %s1369_s22  ;;  %v434_v39 = vmul.f32 %v1423_v28, %v433_v30 }
  0xad   : > { %s1415_s13 = sld [smem:[#allocation7 + %s1632_s26]]  ;;  %v423_v29 = vadd.f32 %v422_v18, %v420_v22  ;;  %v448_v40 = vmul.f32 %v1372_v8, %v447_v32  ;;  %v450_v41 = vstv %s1375_s28 }
  0xae   : > { %s1419_s6 = sld [smem:[#allocation7 + %s368_s27]]  ;;  %s348_s27 = sadd.s32 3, %s1323_s15  ;;  %v453_v44 = vstv %s1378_s7  ;;  %v451_v49 = vmul.f32 %v450_v41, %v1382_v13 }
  0xaf   : > { %s1430_s10 = sld [smem:[#allocation2 + %s370_s3]]  ;;  %v439_v34 = vstv %s1385_s30  ;;  %v426_v35 = vadd.f32 %v425_v23, %v423_v29  ;;  %s356_s30 = sadd.s32 7, %s1323_s15  ;;  %v454_v51 = vmul.f32 %v1390_v16, %v453_v44 }
  0xb0   : > { %s1432_s26 = sld [smem:[#allocation7 + %s346_s12]]  ;;  %v440_v36 = vadd.f32 %v439_v34, %v438_v25  ;;  %v464_v38 = vstv %s1394_s4  ;;  %s364_s4 = sadd.s32 11, %s1323_s15 }
  0xb1   : > { %s1436_s24 = sld [smem:[#allocation7 + %s354_s0]]  ;;  %v429_v42 = vadd.f32 %v428_v26, %v426_v35  ;;  %v468_v45 = vstv %s1398_s8  ;;  %v465_v46 = vmul.f32 %v464_v38, %v1341_v0  ;;  %s1605_s0 = sadd.s32 15, %s1323_s15 }
  0xb2   : > { %s1440_s22 = sld [smem:[#allocation8 + %s393_s11]]  ;;  %v443_v43 = vadd.f32 %v442_v31, %v440_v36  ;;  %v471_v50 = vstv %s1409_s9  ;;  %v469_v53 = vmul.f32 %v1347_v2, %v468_v45 }
  0xb3   : > { %s1449_s14 = sld [smem:[#allocation2 + %s348_s27]]  ;;  %v432_v47 = vadd.f32 %v431_v33, %v429_v42  ;;  %v456_v52 = vstv %s1415_s13  ;;  %v472_v60 = vmul.f32 %v1357_v5, %v471_v50 }
  0xb4   : > { %s1456_s12 = sld [smem:[#allocation2 + %s356_s30]]  ;;  %v446_v48 = vadd.f32 %v445_v37, %v443_v43  ;;  %v459_v58 = vstv %s1419_s6  ;;  %v457_v63 = vmul.f32 %v1402_v21, %v456_v52 }
  0xb5   : > { %s1462_s28 = sld [smem:[#allocation2 + %s364_s4]]  ;;  %v435_v54 = vadd.f32 %v434_v39, %v432_v47  ;;  %v474_v57 = vstv %s1430_s10  ;;  %v460_v9 = vmul.f32 %v1423_v28, %v459_v58  ;;  %s715_s10 = sshll.u32 %s1011_s21, 7 }
  0xb6   : > { %s1468_s7 = sld [smem:[#allocation7 + %s362_s25]]  ;;  %v449_v55 = vadd.f32 %v448_v40, %v446_v48  ;;  %s395_s25 = sadd.s32 3, %s1329_s16  ;;  %v477_v1 = vstv %s1432_s26  ;;  %v475_v4 = vmul.f32 %v1372_v8, %v474_v57 }
  0xb7   : > { %s1476_s8 = sld [smem:[#allocation2 + %s1605_s0]]  ;;  %s1493_s0 = scalar_lea.vmem [#allocation13], %s1304_s2  ;;  %v480_v10 = vstv %s1436_s24  ;;  %v478_v14 = vmul.f32 %v477_v1, %v1382_v13 }
  0xb8   : > { %s1480_s11 = sld [smem:[#allocation7 + %s370_s3]]  ;;  %v466_v56 = vstv %s1440_s22  ;;  %436 = vst [vmem:[%s1493_s0] sm:$0x3] %v435_v54  ;;  %v452_v62 = vadd.f32 %v451_v49, %v449_v55  ;;  %v481_v22 = vmul.f32 %v1390_v16, %v480_v10  ;;  %s1633_s16 = sadd.s32 15, %s1323_s15 }
  0xb9   : > { %v467_v59 = vadd.f32 %v466_v56, %v465_v46  ;;  %s1489_s9 = sld [smem:[#allocation7 + %s348_s27]]  ;;  %v491_v61 = vstv %s1449_s14  ;;  %s533_s15 = sshll.u32 %s1493_s0, 4  ;;  %s1535_s15 = int_to_ptr.vmem [resolvable:$true] %s533_s15 }
  0xba   : > { %s396_s13 = sld [smem:[#allocation8 + %s395_s25]]  ;;  %v495_v6 = vstv %s1456_s12  ;;  %v455_v7 = vadd.f32 %v454_v51, %v452_v62  ;;  %v492_v11 = vmul.f32 %v491_v61, %v1341_v0  ;;  %s1540_s22 = scalar_lea.hbm %s1595_s5, %s715_s10 }
  0xbb   : > { %v470_v3 = vadd.f32 %v469_v53, %v467_v59  ;;  %s1501_s6 = sld [smem:[#allocation7 + %s356_s30]]  ;;  %v498_v15 = vstv %s1462_s28  ;;  %v496_v19 = vmul.f32 %v1347_v2, %v495_v6  ;;  %s519_s27 = scalar_lea.sflag [#allocation4], %s1301_s1 }
  0xbc   : > { %s1510_s2 = sld [smem:[#allocation7 + %s364_s4]]  ;;  %v458_v17 = vadd.f32 %v457_v63, %v455_v7  ;;  %v483_v18 = vstv %s1468_s7  ;;  %v499_v27 = vmul.f32 %v1357_v5, %v498_v15  ;;  %s921_s14 = scalar_lea.vmem %s1535_s15, 128 }
  0xbd   : > { %v473_v12 = vadd.f32 %v472_v60, %v470_v3  ;;  %s389_s3 = sld [smem:[#allocation7 + %s1633_s16]]  ;;  %v501_v23 = vstv %s1476_s8  ;;  %v484_v30 = vmul.f32 %v1402_v21, %v483_v18  ;;  %p922_p2 = scmp.ne.s32.totalorder %s1535_s15, %s921_s14 }
  0xbe   : > { %v461_v24 = vadd.f32 %v460_v9, %v458_v17  ;;  %v486_v25 = vstv %s1480_s11  ;;  %v502_v32 = vmul.f32 %v1372_v8, %v501_v23  ;;  %s1028_s21 = smov [#allocation13]  }
  0xbf   : > { %v476_v20 = vadd.f32 %v475_v4, %v473_v12  ;;  %v504_v31 = vstv %s1489_s9  ;;  %v487_v34 = vmul.f32 %v1423_v28, %v486_v25  ;;  %p923_p7 = pnand %p922_p2, %p1634_p13  ;;  %s925_s30 = sshll.u32 %s1028_s21, 4  ;;  %s926_s30 = int_to_ptr.vmem [resolvable:$false] %s925_s30 }
  0xc0   : > { %v493_v0 = vstv %s396_s13  ;;  %705 = vst [vmem:[%s1493_s0 + $0x2] sm:$0x3] %v461_v24  ;;  %v505_v37 = vmul.f32 %v504_v31, %v1382_v13  ;;  %s927_s12 = scalar_lea.vmem %s926_s30, 256  ;;  %p928_p4 = scmp.lt.s32.totalorder %s1535_s15, %s926_s30 }
  0xc1   : > { %v494_v26 = vadd.f32 %v493_v0, %v492_v11  ;;  %v479_v29 = vadd.f32 %v478_v14, %v476_v20  ;;  %v507_v35 = vstv %s1501_s6  ;;  %p924_p12 = pneg %p923_p7  ;;  %p929_p1 = scmp.lt.s32.totalorder %s927_s12, %s921_s14 }
  0xc2   : > { %v510_v5 = vstv %s1510_s2  ;;  %v508_v40 = vmul.f32 %v1390_v16, %v507_v35 }
  0xc3   : > { %v497_v2 = vadd.f32 %v496_v19, %v494_v26  ;;  %v482_v33 = vadd.f32 %v481_v22, %v479_v29  ;;  %v513_v42 = vstv %s389_s3  ;;  %v511_v8 = vmul.f32 %v1402_v21, %v510_v5  ;;  %p930_p9 = por %p929_p1, %p928_p4 }
  0xc4   : > { %v514_v45 = vmul.f32 %v1423_v28, %v513_v42 }
  0xc5   : > { %v500_v36 = vadd.f32 %v499_v27, %v497_v2  ;;  %v485_v38 = vadd.f32 %v484_v30, %v482_v33  ;;  %p931_p3 = pnand %p930_p9, %p924_p12 }
  0xc7   : > { %v503_v39 = vadd.f32 %v502_v32, %v500_v36  ;;  %v488_v41 = vadd.f32 %v487_v34, %v485_v38 }
  0xc9   : > { %v506_v43 = vadd.f32 %v505_v37, %v503_v39  ;;  %706 = vst [vmem:[%s1493_s0 + $0x4] sm:$0x3] %v488_v41 }
  0xcb   : > { %v509_v44 = vadd.f32 %v508_v40, %v506_v43 }
  0xcd   : > { %v512_v13 = vadd.f32 %v511_v8, %v509_v44 }
  0xcf   : > { %v515_v46 = vadd.f32 %v514_v45, %v512_v13 }
  0xd1   : > { %707 = vst [vmem:[%s1493_s0 + $0x6] sm:$0x3] %v515_v46 }
  0xd2   : > { %934 = shalt.err (!%p931_p3)
}
  0xd3   : > { %s935_s4 = scalar_lea.hbm %s1540_s22, 128  ;;  %s939_s7 = scalar_lea.hbm %s1595_s5, 256 }
  0xd4   : > { %p936_p6 = scmp.ne.s32.totalorder %s1540_s22, %s935_s4  ;;  %p940_p5 = scmp.lt.u32.totalorder %s1540_s22, %s1595_s5 }
  0xd5   : > { %p941_p10 = scmp.lt.u32.totalorder %s939_s7, %s935_s4  ;;  %p943_p2 = scmp.lt.u32.totalorder %s935_s4, %s1540_s22 }
  0xd6   : > { %p937_p0 = pnand %p936_p6, %p1634_p13 }
  0xd7   : > { %p942_p8 = por %p941_p10, %p940_p5 }
  0xd8   : > { %p938_p11 = pneg %p937_p0 }
  0xd9   : > { %p944_p7 = por %p943_p2, %p942_p8 }
  0xdb   : > { %p945_p12 = pnand %p944_p7, %p938_p11 }
  0xdd   : > { %948 = shalt.err (!%p945_p12)
}
  0xde   : > { %s1029_s25 = smov 32   ;;  %s1030_s9 = smov 2  }
  0xdf   : > { %732 = dma.vmem_to_hbm [thread:$0]  (%p1634_p13), %s1535_s15, 128, %s1540_s22, %s519_s27, %s1029_s25, %s1029_s25, %s1030_s9  }
  0xe0 PF: > { %s548_s13 = sand.u32 1, %s999_s18   ;;  %p1635_p4 = scmp.ne.s32.totalorder %s1615_s29, 0 }
  0xe1   : > { %p1636_p1 = scmp.ge.s32.totalorder %s1019_s23, 2  ;;  %s549_s6 = scalar_lea.sflag [#allocation4], %s548_s13 }
  0xe3   : > { %p752_p9 = pnand %p1636_p1, %p1635_p4 }
  0xe5   : > { %994 = dma.done.wait (!%p752_p9), %s549_s6, 128  }
  0xe6   : > { %996 = vsyncadd (!%p752_p9), %s549_s6, 4294967168  ;;  %s27_s23 = sadd.s32 1, %s1019_s23   ;;  %s1637_s2 = sld [smem:[#allocation22_spill]] }
  0xe7   : > { %p24_p3 = scmp.ge.s32.totalorder %s27_s23, 4   ;;  %s1638_s21 = sld [smem:[#allocation20_spill]] }
  0xe8   : > { %s1639_s22 = sld [smem:[#allocation21_spill]]  ;;  %s1640_s18 = smov %s1003_s19 }
  0xe9   : > { %s1641_s19 = smov %s1007_s20  ;;  %26 = sbr.rel (!%p24_p3) target bundleno = 17 (0x11), region = 121 }
  0xec   : > { %s1642_s20 = smov %s1637_s2 }
  0xf0   :  { %554 = vsyncpa [#allocation3], 1 }
  0xf1   :  { %556 = vsyncpa [#allocation3 + $0x1], 1 }
  0xf2   :  { %557 = vsyncpa [#allocation12], 1 }
  0xf3   :  { %559 = vsyncpa [#allocation12 + $0x1], 1 }
  0xf4   :  { %560 = vsyncpa [#allocation4], 1 }
  0xf5   :  { %562 = vsyncpa [#allocation4 + $0x1], 1 }
  0xf6   :  { %563 = vsyncpa [#allocation5], 1 }
  0xf7   :  { %565 = vsyncpa [#allocation5 + $0x1], 1 }
  0xf8   :  { %566 = vsyncpa [#allocation6], 1 }
  0xf9   :  { %568 = vsyncpa [#allocation6 + $0x1], 1 }
  0xfa   :  { %569 = vsyncpa [#allocation9], 1 }

</bundles_post_ra>
